<compile_context>
chip_gen: v7x
topology: tpu7x:2x2x1
jax: 0.10.0
libtpu: 0.0.40
codegen_flags: <defaults>
</compile_context>

<pallas_src>
import functools

import numpy as np
import jax
import jax.numpy as jnp
from jax.experimental import pallas as pl
from jax.experimental.pallas import tpu as pltpu


# ---------------------------------------------------------------------------
# Hyper-parameters (mirror opt.* fields of the PyTorch module, set in-script)
# ---------------------------------------------------------------------------
N_CLASSES = 4
MARGIN = 0.2           # opt.loss_margin_margin
NU = 0.1               # opt.loss_margin_nu
BETA_CONSTANT = False  # opt.loss_margin_beta_constant
BETA_VAL = 1.2         # opt.loss_margin_beta


# ---------------------------------------------------------------------------
# Pallas kernel: margin-loss hot path (tiled over triplets, per-block partials)
# ---------------------------------------------------------------------------
def margin_loss_kernel(n_ref, xt_ref, idx_ref, beta_ref,
                       loss_ref, pair_ref, breg_ref, *, margin):
    i = pl.program_id(0)
    last = pl.num_programs(0) - 1
    n_rows = xt_ref.shape[1]       # batch size N (embeddings resident in VMEM)
    t_blk = idx_ref.shape[1]       # triplets per block (lane axis)

    # ---- in-kernel gather: one-hot selection matmuls on the MXU -----------
    idx = idx_ref[...]                                          # (3, T_BLK) i32
    row = jax.lax.broadcasted_iota(jnp.int32, (n_rows, t_blk), 0)
    oh_a = (row == idx[0:1, :]).astype(jnp.float32)             # (N, T_BLK)
    oh_p = (row == idx[1:2, :]).astype(jnp.float32)
    oh_n = (row == idx[2:3, :]).astype(jnp.float32)
    # selection values in {-1, 0, +1}: X^T @ sel == (anchor - positive) etc.
    sel_ap = (oh_a - oh_p).astype(jnp.bfloat16)
    sel_an = (oh_a - oh_n).astype(jnp.bfloat16)

    xt = xt_ref[...]                                            # (D, N) bf16
    diff_ap = jnp.dot(xt, sel_ap, preferred_element_type=jnp.float32)  # (D,T)
    diff_an = jnp.dot(xt, sel_an, preferred_element_type=jnp.float32)  # (D,T)

    # ---- per-triplet margin terms, lane-dense over T (D on sublanes) -------
    # same 1e-8 epsilon as the PyTorch reference.
    d_ap = jnp.sqrt(jnp.sum(diff_ap * diff_ap, axis=0, keepdims=True) + 1e-8)
    d_an = jnp.sqrt(jnp.sum(diff_an * diff_an, axis=0, keepdims=True) + 1e-8)

    beta = beta_ref[...]                                        # (1, T_BLK) f32
    pos_loss = jnp.maximum(d_ap - beta + margin, 0.0)
    neg_loss = jnp.maximum(beta - d_an + margin, 0.0)
    hinge = pos_loss + neg_loss
    # torch: sum((pos>0) + (neg>0)) on bool tensors == count(pos>0 OR neg>0)
    active = jnp.logical_or(pos_loss > 0.0, neg_loss > 0.0).astype(jnp.float32)

    # ---- per-block partial sums; mask only the (single) padded tail block --
    @pl.when(i != last)
    def _store_unmasked():
        loss_ref[...] = jnp.broadcast_to(jnp.sum(hinge), loss_ref.shape)
        pair_ref[...] = jnp.broadcast_to(jnp.sum(active), pair_ref.shape)
        breg_ref[...] = jnp.broadcast_to(jnp.sum(beta), breg_ref.shape)

    @pl.when(i == last)
    def _store_masked():
        lane = jax.lax.broadcasted_iota(jnp.int32, (1, t_blk), 1)
        valid = ((i * t_blk + lane) < n_ref[0]).astype(jnp.float32)
        loss_ref[...] = jnp.broadcast_to(jnp.sum(valid * hinge), loss_ref.shape)
        pair_ref[...] = jnp.broadcast_to(jnp.sum(valid * active), pair_ref.shape)
        breg_ref[...] = jnp.broadcast_to(jnp.sum(valid * beta), breg_ref.shape)


# ---------------------------------------------------------------------------
# Generation-aware tiling: T_BLK + vmem_limit from actual VMEM capacity.
# ---------------------------------------------------------------------------
def _plan_tiling(num_triplets, dim, n_rows):
    try:
        vmem_cap = int(pltpu.get_tpu_info().vmem_capacity_bytes)
    except Exception:
        vmem_cap = 64 * 1024 * 1024      # conservative (v7x per-TC VMEM)
    budget = vmem_cap // 6               # ~10.6 MiB on v7x, ~21 MiB on v5e/v6e
    # bytes per triplet lane:
    #   double-buffered streams: idx (3 x i32) + beta (f32)
    #   f32 temporaries over N sublanes (~3 copies: one-hots / selections)
    #   f32 temporaries over D sublanes (~3 copies: diffs / squares)
    per_lane = 2 * (3 * 4 + 4) + 12 * n_rows + 12 * dim
    t_blk = max(128, (budget // per_lane) // 128 * 128)
    t_pad128 = ((num_triplets + 127) // 128) * 128
    t_blk = int(min(t_blk, 8192, t_pad128))
    est = t_blk * per_lane + 4 * dim * n_rows + 64 * 1024
    vmem_limit = int(min(max(2 * est, 8 * 1024 * 1024), vmem_cap // 2))
    return t_blk, vmem_limit


def margin_loss_pallas(xt, idx, beta_row, n_actual, *, margin, t_blk, vmem_limit):
    dim, n_rows = xt.shape
    t_pad = idx.shape[1]
    num_blocks = t_pad // t_blk
    kernel = functools.partial(margin_loss_kernel, margin=float(margin))
    out_shape = tuple(jax.ShapeDtypeStruct((num_blocks, 128), jnp.float32)
                      for _ in range(3))
    loss_p, pair_p, breg_p = pl.pallas_call(
        kernel,
        out_shape=out_shape,
        grid_spec=pltpu.PrefetchScalarGridSpec(
            num_scalar_prefetch=1,
            grid=(num_blocks,),
            in_specs=[
                pl.BlockSpec((dim, n_rows), lambda i, n: (0, 0)),  # resident X^T
                pl.BlockSpec((3, t_blk), lambda i, n: (0, i)),     # triplet idx
                pl.BlockSpec((1, t_blk), lambda i, n: (0, i)),     # per-trip beta
            ],
            out_specs=[
                pl.BlockSpec((1, 128), lambda i, n: (i, 0)),
                pl.BlockSpec((1, 128), lambda i, n: (i, 0)),
                pl.BlockSpec((1, 128), lambda i, n: (i, 0)),
            ],
        ),
        compiler_params=pltpu.CompilerParams(
            dimension_semantics=("parallel",),      # megacore-shardable on v7x
            vmem_limit_bytes=int(vmem_limit),
        ),
    )(n_actual, xt, idx, beta_row)
    return loss_p, pair_p, breg_p


# ---------------------------------------------------------------------------
# Deterministic batchminer (host-side glue, mirrors the injected batchminer):
# for each anchor i pick the first other sample with the same label as
# positive and the first sample with a different label as negative.
# ---------------------------------------------------------------------------
def simple_batchminer(labels_np):
    triplets = []
    n = labels_np.shape[0]
    for i in range(n):
        pos = [j for j in range(n) if j != i and labels_np[j] == labels_np[i]]
        neg = [k for k in range(n) if labels_np[k] != labels_np[i]]
        if pos and neg:
            triplets.append((i, pos[0], neg[0]))
    return triplets


# ---------------------------------------------------------------------------
# Criterion forward (glue + Pallas kernel)
# ---------------------------------------------------------------------------
def criterion_forward(batch, labels, beta_param):
    labels_np = np.asarray(labels)
    triplets = simple_batchminer(labels_np)
    if len(triplets) == 0:
        return jnp.float32(0.0)

    tri = np.asarray(triplets, dtype=np.int32)       # (T, 3)
    t = tri.shape[0]
    n_rows, dim = batch.shape

    # Resident gather operand: (D, N) bf16 — tiny, stays in VMEM all kernel.
    xt = jnp.asarray(batch, jnp.bfloat16).T          # (D, N)
    # Lane-dense triplet index table and per-triplet beta (only O(T) bytes).
    idx = jnp.asarray(tri.T)                         # (3, T) int32
    if BETA_CONSTANT:
        beta_row = jnp.full((1, t), float(BETA_VAL), dtype=jnp.float32)
    else:
        anchor_labels = labels_np[tri[:, 0]]
        beta_row = beta_param[anchor_labels].astype(jnp.float32).reshape(1, t)

    t_blk, vmem_limit = _plan_tiling(t, dim, n_rows)
    t_pad = ((t + t_blk - 1) // t_blk) * t_blk
    if t_pad != t:
        idx = jnp.pad(idx, ((0, 0), (0, t_pad - t)))
        beta_row = jnp.pad(beta_row, ((0, 0), (0, t_pad - t)))

    n_actual = jnp.asarray([t], dtype=jnp.int32)
    loss_p, pair_p, breg_p = margin_loss_pallas(
        xt, idx, beta_row, n_actual,
        margin=MARGIN, t_blk=t_blk, vmem_limit=vmem_limit)

    # Final combine (done here so the grid axis stays fully parallel).
    loss_sum = jnp.sum(loss_p[:, 0])
    pair_cnt = jnp.sum(pair_p[:, 0])
    beta_sum = jnp.sum(breg_p[:, 0])
    loss = jnp.where(pair_cnt == 0.0, loss_sum,
                     loss_sum / jnp.maximum(pair_cnt, 1.0))
    if NU:
        if BETA_CONSTANT:
            # Reference sums the (scalar) constant beta once, not per triplet.
            loss = loss + NU * float(BETA_VAL)
        else:
            loss = loss + NU * beta_sum
    return loss


if __name__ == "__main__":
    key = jax.random.PRNGKey(0)
    N, D = 8, 32
    batch = jax.random.normal(key, (N, D), dtype=jnp.float32)
    # L2-normalize embeddings (typical for metric learning)
    batch = batch / jnp.linalg.norm(batch, axis=-1, keepdims=True)
    labels = np.array([0, 0, 1, 1, 2, 2, 3, 3], dtype=np.int32)

    # deterministic parameter init: beta = ones(n_classes) * beta_val
    beta_param = jnp.ones((N_CLASSES,), dtype=jnp.float32) * BETA_VAL

    loss = criterion_forward(batch, labels, beta_param)
    jax.block_until_ready(loss)

    # pure-JAX reference (same bf16 quantization of embeddings as kernel path)
    tri = np.asarray(simple_batchminer(labels), dtype=np.int32)
    batch_q = batch.astype(jnp.bfloat16).astype(jnp.float32)
    a, p, ng = batch_q[tri[:, 0]], batch_q[tri[:, 1]], batch_q[tri[:, 2]]
    d_ap = jnp.sqrt(jnp.sum((a - p) ** 2, -1) + 1e-8)
    d_an = jnp.sqrt(jnp.sum((a - ng) ** 2, -1) + 1e-8)
    b = beta_param[labels[tri[:, 0]]]
    pos_l = jnp.maximum(d_ap - b + MARGIN, 0.0)
    neg_l = jnp.maximum(b - d_an + MARGIN, 0.0)
    pc = jnp.sum(jnp.logical_or(pos_l > 0, neg_l > 0).astype(jnp.float32))
    ref = jnp.where(pc == 0.0, jnp.sum(pos_l + neg_l),
                    jnp.sum(pos_l + neg_l) / jnp.maximum(pc, 1.0))
    ref = ref + NU * jnp.sum(b)
    np.testing.assert_allclose(np.asarray(loss), np.asarray(ref),
                               rtol=2e-4, atol=2e-4)

    print("KERNEL_OK")
</pallas_src>

<mosaic_0001>
module attributes {stable_mosaic.version = 11 : i64} {
  func.func @margin_loss_kernel(%arg0: i32, %arg1: memref<1xi32, #tpu.memory_space<smem>>, %arg2: memref<32x8xbf16, #tpu.memory_space<vmem>>, %arg3: memref<3x128xi32, #tpu.memory_space<vmem>>, %arg4: memref<1x128xf32, #tpu.memory_space<vmem>>, %arg5: memref<1x128xf32, #tpu.memory_space<vmem>>, %arg6: memref<1x128xf32, #tpu.memory_space<vmem>>, %arg7: memref<1x128xf32, #tpu.memory_space<vmem>>) attributes {dimension_semantics = [#tpu.dimension_semantics<parallel>], iteration_bounds = array<i64: 1>, scalar_prefetch = 1 : i64, scratch_operands = 0 : i64, tpu.core_type = #tpu.core_type<tc>, window_params = [{pipeline_mode = #tpu.pipeline_mode<synchronous>, transform_indices = @transform_0, window_bounds = array<i64: 32, 8>}, {transform_indices = @transform_1, window_bounds = array<i64: 3, 128>}, {transform_indices = @transform_2, window_bounds = array<i64: 1, 128>}, {transform_indices = @transform_3, window_bounds = array<i64: 1, 128>}, {transform_indices = @transform_4, window_bounds = array<i64: 1, 128>}, {transform_indices = @transform_5, window_bounds = array<i64: 1, 128>}]} {
    %c0 = arith.constant 0 : index
    %c0_0 = arith.constant 0 : index
    %0 = vector.load %arg3[%c0, %c0_0] : memref<3x128xi32, #tpu.memory_space<vmem>>, vector<3x128xi32>
    %1 = tpu.iota {dimensions = array<i32: 0>} : vector<8x128xi32>
    %2 = vector.extract_strided_slice %0 {offsets = [0, 0], sizes = [1, 128], strides = [1, 1]} : vector<3x128xi32> to vector<1x128xi32>
    %3 = vector.broadcast %2 : vector<1x128xi32> to vector<8x128xi32>
    %4 = arith.cmpi eq, %1, %3 : vector<8x128xi32>
    %5 = arith.extui %4 : vector<8x128xi1> to vector<8x128xi32>
    %6 = arith.sitofp %5 : vector<8x128xi32> to vector<8x128xf32>
    %7 = vector.extract_strided_slice %0 {offsets = [1, 0], sizes = [1, 128], strides = [1, 1]} : vector<3x128xi32> to vector<1x128xi32>
    %8 = vector.broadcast %7 : vector<1x128xi32> to vector<8x128xi32>
    %9 = arith.cmpi eq, %1, %8 : vector<8x128xi32>
    %10 = arith.extui %9 : vector<8x128xi1> to vector<8x128xi32>
    %11 = arith.sitofp %10 : vector<8x128xi32> to vector<8x128xf32>
    %12 = vector.extract_strided_slice %0 {offsets = [2, 0], sizes = [1, 128], strides = [1, 1]} : vector<3x128xi32> to vector<1x128xi32>
    %13 = vector.broadcast %12 : vector<1x128xi32> to vector<8x128xi32>
    %14 = arith.cmpi eq, %1, %13 : vector<8x128xi32>
    %15 = arith.extui %14 : vector<8x128xi1> to vector<8x128xi32>
    %16 = arith.sitofp %15 : vector<8x128xi32> to vector<8x128xf32>
    %17 = arith.subf %6, %11 : vector<8x128xf32>
    %18 = arith.truncf %17 : vector<8x128xf32> to vector<8x128xbf16>
    %19 = arith.subf %6, %16 : vector<8x128xf32>
    %20 = arith.truncf %19 : vector<8x128xf32> to vector<8x128xbf16>
    %c0_1 = arith.constant 0 : index
    %c0_2 = arith.constant 0 : index
    %21 = vector.load %arg2[%c0_1, %c0_2] : memref<32x8xbf16, #tpu.memory_space<vmem>>, vector<32x8xbf16>
    %cst = arith.constant dense<0.000000e+00> : vector<32x128xf32>
    %22 = tpu.matmul %21, %18, %cst {dimension_numbers = #tpu.dot_dimension_numbers<[1], [0], [0], [1], [0, 0, 1, 1], [], []>} : vector<32x8xbf16>, vector<8x128xbf16>, vector<32x128xf32> -> vector<32x128xf32>
    %cst_3 = arith.constant dense<0.000000e+00> : vector<32x128xf32>
    %23 = tpu.matmul %21, %20, %cst_3 {dimension_numbers = #tpu.dot_dimension_numbers<[1], [0], [0], [1], [0, 0, 1, 1], [], []>} : vector<32x8xbf16>, vector<8x128xbf16>, vector<32x128xf32> -> vector<32x128xf32>
    %24 = arith.mulf %22, %22 : vector<32x128xf32>
    %cst_4 = arith.constant dense<0.000000e+00> : vector<128xf32>
    %25 = vector.multi_reduction <add>, %24, %cst_4 [0] : vector<32x128xf32> to vector<128xf32>
    %26 = vector.shape_cast %25 : vector<128xf32> to vector<1x128xf32>
    %cst_5 = arith.constant 9.99999993E-9 : f32
    %27 = vector.broadcast %cst_5 : f32 to vector<1x128xf32>
    %28 = arith.addf %26, %27 : vector<1x128xf32>
    %29 = math.sqrt %28 : vector<1x128xf32>
    %30 = arith.mulf %23, %23 : vector<32x128xf32>
    %cst_6 = arith.constant dense<0.000000e+00> : vector<128xf32>
    %31 = vector.multi_reduction <add>, %30, %cst_6 [0] : vector<32x128xf32> to vector<128xf32>
    %32 = vector.shape_cast %31 : vector<128xf32> to vector<1x128xf32>
    %cst_7 = arith.constant 9.99999993E-9 : f32
    %33 = vector.broadcast %cst_7 : f32 to vector<1x128xf32>
    %34 = arith.addf %32, %33 : vector<1x128xf32>
    %35 = math.sqrt %34 : vector<1x128xf32>
    %c0_8 = arith.constant 0 : index
    %c0_9 = arith.constant 0 : index
    %36 = vector.load %arg4[%c0_8, %c0_9] : memref<1x128xf32, #tpu.memory_space<vmem>>, vector<1x128xf32>
    %37 = arith.subf %29, %36 : vector<1x128xf32>
    %cst_10 = arith.constant 2.000000e-01 : f32
    %38 = vector.broadcast %cst_10 : f32 to vector<1x128xf32>
    %39 = arith.addf %37, %38 : vector<1x128xf32>
    %cst_11 = arith.constant 0.000000e+00 : f32
    %40 = vector.broadcast %cst_11 : f32 to vector<1x128xf32>
    %41 = arith.maximumf %39, %40 : vector<1x128xf32>
    %42 = arith.subf %36, %35 : vector<1x128xf32>
    %cst_12 = arith.constant 2.000000e-01 : f32
    %43 = vector.broadcast %cst_12 : f32 to vector<1x128xf32>
    %44 = arith.addf %42, %43 : vector<1x128xf32>
    %cst_13 = arith.constant 0.000000e+00 : f32
    %45 = vector.broadcast %cst_13 : f32 to vector<1x128xf32>
    %46 = arith.maximumf %44, %45 : vector<1x128xf32>
    %47 = arith.addf %41, %46 : vector<1x128xf32>
    %cst_14 = arith.constant 0.000000e+00 : f32
    %48 = vector.broadcast %cst_14 : f32 to vector<1x128xf32>
    %49 = arith.cmpf ogt, %41, %48 : vector<1x128xf32>
    %cst_15 = arith.constant 0.000000e+00 : f32
    %50 = vector.broadcast %cst_15 : f32 to vector<1x128xf32>
    %51 = arith.cmpf ogt, %46, %50 : vector<1x128xf32>
    %52 = arith.ori %49, %51 : vector<1x128xi1>
    %53 = arith.extui %52 : vector<1x128xi1> to vector<1x128xi32>
    %54 = arith.sitofp %53 : vector<1x128xi32> to vector<1x128xf32>
    %c0_i32 = arith.constant 0 : i32
    %55 = arith.cmpi ne, %arg0, %c0_i32 : i32
    %56 = arith.extui %55 : i1 to i32
    %c0_i32_16 = arith.constant 0 : i32
    %57 = arith.cmpi ne, %56, %c0_i32_16 : i32
    scf.if %57 {
      %61 = vector.shape_cast %47 : vector<1x128xf32> to vector<1x1x128xf32>
      %cst_19 = arith.constant dense<0.000000e+00> : vector<1xf32>
      %62 = vector.multi_reduction <add>, %61, %cst_19 [1, 2] : vector<1x1x128xf32> to vector<1xf32>
      %63 = vector.shape_cast %62 : vector<1xf32> to vector<1x1x1xf32>
      %64 = vector.extract %63[0, 0, 0] : f32 from vector<1x1x1xf32>
      %65 = vector.broadcast %64 : f32 to vector<1x128xf32>
      %c0_20 = arith.constant 0 : index
      %c0_21 = arith.constant 0 : index
      %66 = vector.load %arg5[%c0_20, %c0_21] : memref<1x128xf32, #tpu.memory_space<vmem>>, vector<1x128xf32>
      tpu.vector_store %arg5[%c0_20, %c0_21], %65 {strides = array<i32>} : memref<1x128xf32, #tpu.memory_space<vmem>>, vector<1x128xf32>,
      %67 = vector.shape_cast %54 : vector<1x128xf32> to vector<1x1x128xf32>
      %cst_22 = arith.constant dense<0.000000e+00> : vector<1xf32>
      %68 = vector.multi_reduction <add>, %67, %cst_22 [1, 2] : vector<1x1x128xf32> to vector<1xf32>
      %69 = vector.shape_cast %68 : vector<1xf32> to vector<1x1x1xf32>
      %70 = vector.extract %69[0, 0, 0] : f32 from vector<1x1x1xf32>
      %71 = vector.broadcast %70 : f32 to vector<1x128xf32>
      %c0_23 = arith.constant 0 : index
      %c0_24 = arith.constant 0 : index
      %72 = vector.load %arg6[%c0_23, %c0_24] : memref<1x128xf32, #tpu.memory_space<vmem>>, vector<1x128xf32>
      tpu.vector_store %arg6[%c0_23, %c0_24], %71 {strides = array<i32>} : memref<1x128xf32, #tpu.memory_space<vmem>>, vector<1x128xf32>,
      %73 = vector.shape_cast %36 : vector<1x128xf32> to vector<1x1x128xf32>
      %cst_25 = arith.constant dense<0.000000e+00> : vector<1xf32>
      %74 = vector.multi_reduction <add>, %73, %cst_25 [1, 2] : vector<1x1x128xf32> to vector<1xf32>
      %75 = vector.shape_cast %74 : vector<1xf32> to vector<1x1x1xf32>
      %76 = vector.extract %75[0, 0, 0] : f32 from vector<1x1x1xf32>
      %77 = vector.broadcast %76 : f32 to vector<1x128xf32>
      %c0_26 = arith.constant 0 : index
      %c0_27 = arith.constant 0 : index
      %78 = vector.load %arg7[%c0_26, %c0_27] : memref<1x128xf32, #tpu.memory_space<vmem>>, vector<1x128xf32>
      tpu.vector_store %arg7[%c0_26, %c0_27], %77 {strides = array<i32>} : memref<1x128xf32, #tpu.memory_space<vmem>>, vector<1x128xf32>,
    } else {
    }
    %c0_i32_17 = arith.constant 0 : i32
    %58 = arith.cmpi eq, %arg0, %c0_i32_17 : i32
    %59 = arith.extui %58 : i1 to i32
    %c0_i32_18 = arith.constant 0 : i32
    %60 = arith.cmpi ne, %59, %c0_i32_18 : i32
    scf.if %60 {
      %61 = tpu.iota {dimensions = array<i32: 1>} : vector<1x128xi32>
      %c128_i32 = arith.constant 128 : i32
      %62 = arith.muli %arg0, %c128_i32 : i32
      %63 = vector.broadcast %62 : i32 to vector<1x128xi32>
      %64 = arith.addi %63, %61 : vector<1x128xi32>
      %c0_19 = arith.constant 0 : index
      %65 = memref.load %arg1[%c0_19] : memref<1xi32, #tpu.memory_space<smem>>
      %66 = vector.broadcast %65 : i32 to vector<1x128xi32>
      %67 = arith.cmpi slt, %64, %66 : vector<1x128xi32>
      %68 = arith.extui %67 : vector<1x128xi1> to vector<1x128xi32>
      %69 = arith.sitofp %68 : vector<1x128xi32> to vector<1x128xf32>
      %70 = arith.mulf %69, %47 : vector<1x128xf32>
      %71 = vector.shape_cast %70 : vector<1x128xf32> to vector<1x1x128xf32>
      %cst_20 = arith.constant dense<0.000000e+00> : vector<1xf32>
      %72 = vector.multi_reduction <add>, %71, %cst_20 [1, 2] : vector<1x1x128xf32> to vector<1xf32>
      %73 = vector.shape_cast %72 : vector<1xf32> to vector<1x1x1xf32>
      %74 = vector.extract %73[0, 0, 0] : f32 from vector<1x1x1xf32>
      %75 = vector.broadcast %74 : f32 to vector<1x128xf32>
      %c0_21 = arith.constant 0 : index
      %c0_22 = arith.constant 0 : index
      %76 = vector.load %arg5[%c0_21, %c0_22] : memref<1x128xf32, #tpu.memory_space<vmem>>, vector<1x128xf32>
      tpu.vector_store %arg5[%c0_21, %c0_22], %75 {strides = array<i32>} : memref<1x128xf32, #tpu.memory_space<vmem>>, vector<1x128xf32>,
      %77 = arith.mulf %69, %54 : vector<1x128xf32>
      %78 = vector.shape_cast %77 : vector<1x128xf32> to vector<1x1x128xf32>
      %cst_23 = arith.constant dense<0.000000e+00> : vector<1xf32>
      %79 = vector.multi_reduction <add>, %78, %cst_23 [1, 2] : vector<1x1x128xf32> to vector<1xf32>
      %80 = vector.shape_cast %79 : vector<1xf32> to vector<1x1x1xf32>
      %81 = vector.extract %80[0, 0, 0] : f32 from vector<1x1x1xf32>
      %82 = vector.broadcast %81 : f32 to vector<1x128xf32>
      %c0_24 = arith.constant 0 : index
      %c0_25 = arith.constant 0 : index
      %83 = vector.load %arg6[%c0_24, %c0_25] : memref<1x128xf32, #tpu.memory_space<vmem>>, vector<1x128xf32>
      tpu.vector_store %arg6[%c0_24, %c0_25], %82 {strides = array<i32>} : memref<1x128xf32, #tpu.memory_space<vmem>>, vector<1x128xf32>,
      %84 = arith.mulf %69, %36 : vector<1x128xf32>
      %85 = vector.shape_cast %84 : vector<1x128xf32> to vector<1x1x128xf32>
      %cst_26 = arith.constant dense<0.000000e+00> : vector<1xf32>
      %86 = vector.multi_reduction <add>, %85, %cst_26 [1, 2] : vector<1x1x128xf32> to vector<1xf32>
      %87 = vector.shape_cast %86 : vector<1xf32> to vector<1x1x1xf32>
      %88 = vector.extract %87[0, 0, 0] : f32 from vector<1x1x1xf32>
      %89 = vector.broadcast %88 : f32 to vector<1x128xf32>
      %c0_27 = arith.constant 0 : index
      %c0_28 = arith.constant 0 : index
      %90 = vector.load %arg7[%c0_27, %c0_28] : memref<1x128xf32, #tpu.memory_space<vmem>>, vector<1x128xf32>
      tpu.vector_store %arg7[%c0_27, %c0_28], %89 {strides = array<i32>} : memref<1x128xf32, #tpu.memory_space<vmem>>, vector<1x128xf32>,
    } else {
    }
    return
  }
  func.func @transform_0(%arg0: i32, %arg1: memref<1xi32, #tpu.memory_space<smem>>) -> (i32, i32) {
    %c0_i32 = arith.constant 0 : i32
    %c0_i32_0 = arith.constant 0 : i32
    %c0_i32_1 = arith.constant 0 : i32
    return %c0_i32, %c0_i32_0 : i32, i32
  }
  func.func @transform_1(%arg0: i32, %arg1: memref<1xi32, #tpu.memory_space<smem>>) -> (i32, i32) {
    %c0_i32 = arith.constant 0 : i32
    %c0_i32_0 = arith.constant 0 : i32
    return %c0_i32, %arg0 : i32, i32
  }
  func.func @transform_2(%arg0: i32, %arg1: memref<1xi32, #tpu.memory_space<smem>>) -> (i32, i32) {
    %c0_i32 = arith.constant 0 : i32
    %c0_i32_0 = arith.constant 0 : i32
    return %c0_i32, %arg0 : i32, i32
  }
  func.func @transform_3(%arg0: i32, %arg1: memref<1xi32, #tpu.memory_space<smem>>) -> (i32, i32) {
    %c0_i32 = arith.constant 0 : i32
    %c0_i32_0 = arith.constant 0 : i32
    return %arg0, %c0_i32 : i32, i32
  }
  func.func @transform_4(%arg0: i32, %arg1: memref<1xi32, #tpu.memory_space<smem>>) -> (i32, i32) {
    %c0_i32 = arith.constant 0 : i32
    %c0_i32_0 = arith.constant 0 : i32
    return %arg0, %c0_i32 : i32, i32
  }
  func.func @transform_5(%arg0: i32, %arg1: memref<1xi32, #tpu.memory_space<smem>>) -> (i32, i32) {
    %c0_i32 = arith.constant 0 : i32
    %c0_i32_0 = arith.constant 0 : i32
    return %arg0, %c0_i32 : i32, i32
  }
}

</mosaic_0001>

<bundles_post_ra>
// kernel: tpu_custom_call.1
= control target key start
LH: loop header
LB: loop body
LE: loop exit
PB: predicated region body
PF: predicated region fallthrough
CT: control target
= control target key end

     0   :  { %13 = vsyncpa [#allocation5], 0  ;;  %v23_v0 = vlaneseq  ;;  %vm64_vm0 = vcmask 64512   ;;  %s599_s0 = inlined_call_operand.<no memory space> [shape: s32[1], index: 0, kind: input, shape index: {}]   ;;  %s600_s1 = inlined_call_operand.vmem [shape: bf16[32,8], index: 1, kind: input, shape index: {}]   ;;  %s601_s2 = inlined_call_operand.vmem [shape: s32[3,128], index: 2, kind: input, shape index: {}]   ;;  %s602_s3 = inlined_call_operand.vmem [shape: f32[1,128], index: 3, kind: input, shape index: {}]   ;;  %s603_s4 = inlined_call_operand.hbm [shape: f32[1,128], index: 4, kind: output, shape index: {0}]   ;;  %s604_s5 = inlined_call_operand.hbm [shape: f32[1,128], index: 5, kind: output, shape index: {1}]   ;;  %s605_s6 = inlined_call_operand.hbm [shape: f32[1,128], index: 6, kind: output, shape index: {2}]  }
   0x1   :  { %v408_v1 = vld [vmem:[%s600_s1] sm:$0xff]  }
   0x2   :  { %v24_v2 = vshrl.u32 %v23_v0, 7 }
   0x3   :  { %14 = vsyncpa [#allocation7], 0  ;;  %v22_v3 = vld [vmem:[%s601_s2] sm:$0x7]  ;;  %386 = vmatprep.mubr.msk.bf16.mxu0 %vm64_vm0, %v408_v1  ;;  %392 = vmatprep.mubr.msk.bf16.mxu1 %vm64_vm0, %v408_v1  ;;  %v484_v10 = vmov 0.0   ;;  %vm71_vm4 = vcmask 1043456   ;;  %v282_v22 = vstv %s599_s0 }
   0x4   :  { %v27_v4 = vsub.s32 0, %v24_v2  ;;  %v34_v5 = vsub.s32 1, %v24_v2  ;;  %v41_v6 = vsub.s32 2, %v24_v2  ;;  %v409_v20 = vld [vmem:[%s600_s1 + $0x8] sm:$0xff]   ;;  %v277_v21 = vand.u32 127, %v23_v0  ;;  %s485_s0 = smov [#allocation4]  }
   0x5   :  { %v218_v23 = vld [vmem:[%s602_s3] sm:$0x1]  ;;  %vm287_vm6 = vcmask 1040384   ;;  %s332_s1 = sshll.u32 %s485_s0, 4  ;;  %s486_s30 = smov [#allocation6]   ;;  %s333_s1 = int_to_ptr.vmem [resolvable:$true] %s332_s1 }
   0x6   :  { %v28_v7 = vrot.slane %v22_v3, %v27_v4  ;;  %v35_v8 = vrot.slane %v22_v3, %v34_v5  ;;  %v42_v9 = vrot.slane %v22_v3, %v41_v6  ;;  %vm283_vm5 = vcmp.lt.s32.totalorder %v277_v21, %v282_v22  ;;  %s342_s7 = sshll.u32 %s486_s30, 4  ;;  %s487_s8 = smov [#allocation8]   ;;  %s343_s7 = int_to_ptr.vmem [resolvable:$true] %s342_s7 }
   0x7   :  { %v546_v24 = vsel %vm283_vm5, 1.0, %v484_v10  ;;  %s352_s9 = sshll.u32 %s487_s8, 4  ;;  %s414_s10 = scalar_lea.vmem %s333_s1, 16  ;;  %s567_s9 = int_to_ptr.vmem [resolvable:$true] %s352_s9 }
   0x8   :  { %vm29_vm1 = vcmp.eq.s32.totalorder %v24_v2, %v28_v7  ;;  %vm36_vm2 = vcmp.eq.s32.totalorder %v24_v2, %v35_v8  ;;  %vm43_vm3 = vcmp.eq.s32.totalorder %v24_v2, %v42_v9  ;;  %v313_v25 = vmul.f32 %v546_v24, %v218_v23  ;;  %p415_p0 = scmp.ne.s32.totalorder %s333_s1, %s414_s10  ;;  %s418_s11 = scalar_lea.vmem %s333_s1, 32 }
   0x9   :  { %v367_v11 = vsel %vm29_vm1, 1.0, %v484_v10  ;;  %v368_v12 = vsel %vm36_vm2, 1.0, %v484_v10  ;;  %v369_v13 = vsel %vm43_vm3, 1.0, %v484_v10  ;;  %p419_p1 = scmp.lt.s32.totalorder %s333_s1, %s333_s1  ;;  %p420_p2 = scmp.lt.s32.totalorder %s418_s11, %s414_s10 }
   0xa   :  { %v46_v14 = vsub.f32 %v367_v11, %v368_v12  ;;  %v48_v15 = vsub.f32 %v367_v11, %v369_v13  ;;  %v314_v26 = vsel %vm287_vm6, %v313_v25, 0.0 }
   0xb   :  { %315 = vadd.xlane.f32.xlu1 %v314_v26  ;;  %p421_p3 = por %p420_p2, %p419_p1 }
   0xc   :  { %v47_v16 = vpack.c.bf16 %v46_v14, %v46_v14  ;;  %v49_v17 = vpack.c.bf16 %v48_v15, %v48_v15 }
   0xd   :  { %p422_p4 = pnand %p421_p3, %p415_p0 }
   0xe   :  { %396 = vmatprep.subr.msk.bf16.mxu0 %vm71_vm4, %v47_v16  ;;  %397 = vmatprep.subr.msk.bf16.mxu1 %vm71_vm4, %v49_v17  ;;  %v73_v18 = vsel %vm71_vm4, %v47_v16, 0  ;;  %v125_v19 = vsel %vm71_vm4, %v49_v17, 0 }
   0xf   :  { %385 = vmatpush3.bf16.msra.mxu0 %v73_v18  ;;  %391 = vmatpush3.bf16.msra.mxu1 %v125_v19 }
  0x12   :  { %387 = vmatmul.mubr.msk.bf16.vlgmr.msra.gmra.mrb[0].mxu0 %vm64_vm0, %v409_v20  ;;  %393 = vmatmul.mubr.msk.bf16.vlgmr.msra.gmra.mrb[0].mxu1 %vm64_vm0, %v409_v20 }
  0x98   :  { %v316_v22 = vpop.xlane.xlu1 %315 }
  0xe5   :  { %v388_v27 = vpop.f32.mrb[0].mxu0  ;;  %v394_v28 = vpop.f32.mrb[0].mxu1 }
  0xe6   :  { %v109_v29 = vpop.f32.mrb[1].mxu0  ;;  %v161_v30 = vpop.f32.mrb[1].mxu1  ;;  %v178_v39 = vmul.f32 %v388_v27, %v388_v27  ;;  %v199_v40 = vmul.f32 %v394_v28, %v394_v28 }
  0xe7   :  { %v389_v31 = vpop.f32.mrb[2].mxu0  ;;  %v395_v32 = vpop.f32.mrb[2].mxu1  ;;  %v176_v35 = vmul.f32 %v109_v29, %v109_v29  ;;  %v197_v36 = vmul.f32 %v161_v30, %v161_v30 }
  0xe8   :  { %v112_v33 = vpop.f32.mrb[3].mxu0  ;;  %v164_v34 = vpop.f32.mrb[3].mxu1  ;;  %v179_v43 = vmul.f32 %v389_v31, %v389_v31  ;;  %v200_v44 = vmul.f32 %v395_v32, %v395_v32 }
  0xe9   :  { %v177_v37 = vmul.f32 %v112_v33, %v112_v33  ;;  %v198_v38 = vmul.f32 %v164_v34, %v164_v34 }
  0xeb   :  { %v180_v41 = vadd.f32 %v177_v37, %v176_v35  ;;  %v201_v42 = vadd.f32 %v198_v38, %v197_v36 }
  0xed   :  { %v181_v45 = vadd.f32 %v180_v41, %v178_v39  ;;  %v202_v46 = vadd.f32 %v201_v42, %v199_v40 }
  0xef   :  { %v182_v47 = vadd.f32 %v181_v45, %v179_v43  ;;  %v203_v48 = vadd.f32 %v202_v46, %v200_v44 }
  0xf1   :  { %v183_v49 = vrot.slane %v182_v47, 4  ;;  %v204_v50 = vrot.slane %v203_v48, 4 }
  0xf3   :  { %v184_v51 = vadd.f32 %v183_v49, %v182_v47  ;;  %v205_v52 = vadd.f32 %v204_v50, %v203_v48 }
  0xf5   :  { %v185_v53 = vrot.slane %v184_v51, 2  ;;  %v206_v54 = vrot.slane %v205_v52, 2 }
  0xf7   :  { %v186_v55 = vadd.f32 %v185_v53, %v184_v51  ;;  %v207_v56 = vadd.f32 %v206_v54, %v205_v52 }
  0xf9   :  { %v187_v57 = vrot.slane %v186_v55, 1  ;;  %v208_v58 = vrot.slane %v207_v56, 1 }
  0xfb   :  { %v188_v59 = vadd.f32 %v187_v57, %v186_v55  ;;  %v209_v60 = vadd.f32 %v208_v58, %v207_v56 }
  0xfd   :  { %v189_v61 = vadd.f32 1e-08, %v188_v59  ;;  %v210_v62 = vadd.f32 1e-08, %v209_v60 }
  0xff   :  { %410 = vrsqrt.f32 %v189_v61  ;;  %vm192_vm7 = vcmp.eq.f32.partialorder %v189_v61, inf  ;;  %v195_v2 = vand.u32 2147483648, %v189_v61  ;;  %vm194_vm8 = vcmp.eq.f32.partialorder %v189_v61, 0.0 }
 0x100   :  { %412 = vrsqrt.f32 %v210_v62  ;;  %vm213_vm9 = vcmp.eq.f32.partialorder %v210_v62, inf  ;;  %v216_v5 = vand.u32 2147483648, %v210_v62  ;;  %vm215_vm10 = vcmp.eq.f32.partialorder %v210_v62, 0.0 }
 0x109   :  { %v411_v63 = vpop.eup %410 }
 0x10a   :  { %v413_v0 = vpop.eup %412  ;;  %v191_v1 = vmul.f32 %v411_v63, %v189_v61 }
 0x10b   :  { %v212_v3 = vmul.f32 %v413_v0, %v210_v62 }
 0x10c   :  { %v193_v4 = vsel %vm192_vm7, %v189_v61, %v191_v1 }
 0x10d   :  { %v196_v6 = vsel %vm194_vm8, %v195_v2, %v193_v4  ;;  %v214_v7 = vsel %vm213_vm9, %v210_v62, %v212_v3 }
 0x10e   :  { %v217_v8 = vsel %vm215_vm10, %v216_v5, %v214_v7  ;;  %v219_v9 = vsub.f32 %v196_v6, %v218_v23 }
 0x10f   :  { %v222_v11 = vsub.f32 %v218_v23, %v217_v8  ;;  %v317_v23 = vrot.slane %v316_v22, 4 }
 0x110   :  { %v220_v12 = vadd.f32 0.2, %v219_v9 }
 0x111   :  { %v223_v13 = vadd.f32 0.2, %v222_v11  ;;  %v318_v25 = vadd.f32 %v317_v23, %v316_v22 }
 0x112   :  { %v221_v14 = vmax.f32 %v220_v12, 0.0 }
 0x113   :  { %v224_v15 = vmax.f32 %v223_v13, 0.0  ;;  %v319_v29 = vrot.slane %v318_v25, 2 }
 0x114   :  { %vm226_vm11 = vcmp.gt.f32.partialorder %v221_v14, 0.0 }
 0x115   :  { %v225_v16 = vadd.f32 %v224_v15, %v221_v14  ;;  %vm227_vm12 = vcmp.gt.f32.partialorder %v224_v15, 0.0  ;;  %v320_v34 = vadd.f32 %v319_v29, %v318_v25 }
 0x116   :  { %vm228_vm13 = vmor %vm226_vm11, %vm227_vm12 }
 0x117   :  { %v286_v17 = vmul.f32 %v546_v24, %v225_v16  ;;  %v376_v18 = vsel %vm228_vm13, 1.0, %v484_v10  ;;  %v321_v38 = vrot.slane %v320_v34, 1 }
 0x118   :  { %v300_v20 = vmul.f32 %v546_v24, %v376_v18 }
 0x119   :  { %v288_v19 = vsel %vm287_vm6, %v286_v17, 0.0  ;;  %v322_v41 = vadd.f32 %v321_v38, %v320_v34 }
 0x11a   :  { %289 = vadd.xlane.f32.xlu0 %v288_v19  ;;  %v301_v21 = vsel %vm287_vm6, %v300_v20, 0.0 }
 0x11e   :  { %302 = vadd.xlane.f32.xlu0 %v301_v21 }
 0x1a7   :  { %v290_v26 = vpop.xlane.xlu0 %289 }
 0x1a8   :  { %v291_v27 = vrot.slane %v290_v26, 4 }
 0x1aa   :  { %v292_v28 = vadd.f32 %v291_v27, %v290_v26 }
 0x1ab   :  { %v303_v30 = vpop.xlane.xlu0 %302 }
 0x1ac   :  { %v293_v31 = vrot.slane %v292_v28, 2  ;;  %v304_v32 = vrot.slane %v303_v30, 4 }
 0x1ae   :  { %v305_v33 = vadd.f32 %v304_v32, %v303_v30  ;;  %v294_v10 = vadd.f32 %v293_v31, %v292_v28 }
 0x1b0   :  { %v306_v35 = vrot.slane %v305_v33, 2  ;;  %v295_v36 = vrot.slane %v294_v10, 1 }
 0x1b2   :  { %v307_v24 = vadd.f32 %v306_v35, %v305_v33  ;;  %v296_v37 = vadd.f32 %v295_v36, %v294_v10 }
 0x1b4   :  { %398 = vpush %v296_v37  ;;  %v308_v39 = vrot.slane %v307_v24, 1 }
 0x1b6   :  { %v309_v40 = vadd.f32 %v308_v39, %v307_v24 }
 0x1b8   :  { %400 = vpush %v309_v40 }
 0x1b9   :  { %402 = vpush %v322_v41 }
 0x1e5   :  { %s399_s3 = spop %398 }
 0x1e6   :  { %v298_v42 = vstv %s399_s3 }
 0x1e7   :  { %299 = vst [vmem:[#allocation4] sm:$0x1] %v298_v42 }
 0x1e8   :  { %425 = shalt.err (!%p422_p4)
}
 0x1e9   :  { %s426_s14 = scalar_lea.hbm %s603_s4, 16 }
 0x1ea   :  { %p427_p5 = scmp.ne.s32.totalorder %s603_s4, %s426_s14  ;;  %p430_p6 = scmp.lt.u32.totalorder %s426_s14, %s603_s4 }
 0x1ec   :  { %p432_p7 = pnand %p430_p6, %p427_p5 }
 0x1ee   :  { %435 = shalt.err (!%p432_p7)
}
 0x1ef   :  { %335 = dma.vmem_to_hbm [thread:$0]  %s333_s1, 16, %s603_s4, [#allocation5]  }
 0x1f0   :  { %s401_s21 = spop %400  ;;  %s436_s23 = scalar_lea.vmem %s343_s7, 16 }
 0x1f1   :  { %v311_v43 = vstv %s401_s21  ;;  %s403_s22 = spop %402  ;;  %p437_p8 = scmp.ne.s32.totalorder %s343_s7, %s436_s23 }
 0x1f2   :  { %312 = vst [vmem:[#allocation6] sm:$0x1] %v311_v43  ;;  %v324_v44 = vstv %s403_s22  ;;  %s440_s24 = scalar_lea.vmem %s343_s7, 32  ;;  %p441_p9 = scmp.lt.s32.totalorder %s343_s7, %s343_s7 }
 0x1f3   :  { %325 = vst [vmem:[#allocation8] sm:$0x1] %v324_v44  ;;  %p442_p10 = scmp.lt.s32.totalorder %s440_s24, %s436_s23 }
 0x1f5   :  { %p443_p11 = por %p442_p10, %p441_p9 }
 0x1f7   :  { %p444_p12 = pnand %p443_p11, %p437_p8 }
 0x1f9   :  { %447 = shalt.err (!%p444_p12)
}
 0x1fa   :  { %s448_s4 = scalar_lea.hbm %s604_s5, 16 }
 0x1fb   :  { %p449_p13 = scmp.ne.s32.totalorder %s604_s5, %s448_s4  ;;  %p452_p0 = scmp.lt.u32.totalorder %s448_s4, %s604_s5 }
 0x1fd   :  { %p454_p1 = pnand %p452_p0, %p449_p13 }
 0x1ff   :  { %457 = shalt.err (!%p454_p1)
}
 0x200   :  { %345 = dma.vmem_to_hbm [thread:$0]  %s343_s7, 16, %s604_s5, [#allocation7]  }
 0x201   :  { %s458_s3 = scalar_lea.vmem %s567_s9, 16  ;;  %s462_s30 = scalar_lea.vmem %s567_s9, 32 }
 0x202   :  { %p459_p2 = scmp.ne.s32.totalorder %s567_s9, %s458_s3  ;;  %p463_p3 = scmp.lt.s32.totalorder %s567_s9, %s567_s9 }
 0x203   :  { %p464_p4 = scmp.lt.s32.totalorder %s462_s30, %s458_s3 }
 0x205   :  { %p465_p5 = por %p464_p4, %p463_p3 }
 0x207   :  { %p466_p6 = pnand %p465_p5, %p459_p2 }
 0x209   :  { %469 = shalt.err (!%p466_p6)
}
 0x20a   :  { %s470_s11 = scalar_lea.hbm %s605_s6, 16 }
 0x20b   :  { %p471_p7 = scmp.ne.s32.totalorder %s605_s6, %s470_s11  ;;  %p474_p8 = scmp.lt.u32.totalorder %s470_s11, %s605_s6 }
 0x20d   :  { %p476_p9 = pnand %p474_p8, %p471_p7 }
 0x20f   :  { %479 = shalt.err (!%p476_p9)
}
 0x210   :  { %355 = dma.vmem_to_hbm [thread:$0]  %s567_s9, 16, %s605_s6, [#allocation7]  }
 0x211   :  { %480 = dma.done.wait [#allocation5], 16  }
 0x212   :  { %481 = vsyncadd [#allocation5], 4294967280 }
 0x213   :  { %482 = dma.done.wait [#allocation7], 32  }
 0x214   :  { %483 = vsyncadd [#allocation7], 4294967264 }
 0x215   :  { %365 = vsyncpa [#allocation5], 1 }
 0x216   :  { %366 = vsyncpa [#allocation7], 1 }

</bundles_post_ra>
